<compile_context>
chip_gen: v7x
topology: tpu7x:2x2x1
jax: 0.10.0
libtpu: 0.0.40
codegen_flags: <defaults>
</compile_context>

<pallas_src>
import functools

import jax
import jax.numpy as jnp
from jax.experimental import pallas as pl
from jax.experimental.pallas import tpu as pltpu


# --------------------------------------------------------------------------
# Kernels
# --------------------------------------------------------------------------
def _linear_kernel_acc_out(x_ref, w_ref, o_ref):
    """Accumulate directly into the (f32) output block (resident across K)."""
    @pl.when(pl.program_id(2) == 0)
    def _():
        o_ref[...] = jnp.zeros_like(o_ref)

    o_ref[...] += jnp.dot(
        x_ref[...], w_ref[...], preferred_element_type=jnp.float32
    )


def _linear_kernel_scratch(x_ref, w_ref, o_ref, acc_ref):
    """f32 scratch accumulator; cast to the output dtype on the last k-step."""
    @pl.when(pl.program_id(2) == 0)
    def _():
        acc_ref[...] = jnp.zeros_like(acc_ref)

    acc_ref[...] += jnp.dot(
        x_ref[...], w_ref[...], preferred_element_type=jnp.float32
    )

    @pl.when(pl.program_id(2) == pl.num_programs(2) - 1)
    def _():
        o_ref[...] = acc_ref[...].astype(o_ref.dtype)


# --------------------------------------------------------------------------
# Tiling heuristics
# --------------------------------------------------------------------------
def _round_up(x, m):
    return ((x + m - 1) // m) * m


@functools.lru_cache(maxsize=1)
def _tpu_generation():
    try:
        kind = jax.devices()[0].device_kind.lower()
    except Exception:
        return 0
    for tag, gen in (("v7", 7), ("7x", 7), ("v6", 6), ("v5", 5), ("v4", 4)):
        if tag in kind:
            return gen
    return 0


def _default_tiles(gen, compute_itemsize):
    """(tm_max, tn_max, tk_max, vmem_limit_bytes), dtype-aware."""
    low = compute_itemsize <= 2  # bf16 / fp8 / int8 inputs
    if gen >= 7:
        # 64 MiB physical VMEM per TC. bf16 512x2048 tiles ~ 13 MiB dbl-buffered.
        return (512, 2048 if low else 1024, 512, 48 << 20)
    if gen == 6:
        # 128 MiB VMEM, 2x256x256 MXU. bf16 1024x2048 raises arithmetic
        # intensity above the ~650 FLOP/byte HBM ridge.
        if low:
            return (1024, 2048, 1024, 96 << 20)
        return (512, 1024, 1024, 96 << 20)
    if gen == 5:
        # Only 1 vst slot/bundle: large tk halves accumulator RMW traffic.
        if low:
            return (512, 1024, 2048, 64 << 20)
        return (512, 512, 1024, 64 << 20)
    # Unknown / older / interpret: conservative.
    return (256, 512, 512, 48 << 20)


def _pick_tile(dim_p, t_max, granule):
    """dim_p is a multiple of `granule`.  Return the largest tile <= t_max that
    is a multiple of `granule` and divides dim_p (so no padding is needed).
    If the only divisors are tiny, fall back to t_max (padding is cheaper)."""
    if dim_p <= t_max:
        return dim_p
    cap = (t_max // granule) * granule
    t = cap
    best = granule
    while t >= granule:
        if dim_p % t == 0:
            best = t
            break
        t -= granule
    if best * 4 < cap:       # divisor too small -> accept padding instead
        return cap
    return best


def _weight_block_spec(tk, tn, extra_buffering):
    index_map = lambda i, j, k: (k, j)
    if extra_buffering and hasattr(pl, "Buffered"):
        try:
            return pl.BlockSpec((tk, tn), index_map, pipeline_mode=pl.Buffered(3))
        except TypeError:
            pass  # older jax without pipeline_mode kwarg
    return pl.BlockSpec((tk, tn), index_map)


# --------------------------------------------------------------------------
# Per-call jitted apply (weight is ALREADY prepared as [K_p, N_p])
# --------------------------------------------------------------------------
@functools.partial(
    jax.jit,
    static_argnames=(
        "n_out", "k_in", "compute_dtype", "tm", "tn", "tk", "force_pallas",
    ),
)
def _linear_apply(
    x,
    w_kn,                 # prepared weight, [K_p, N_p], K_p/N_p multiples of 128
    *,
    n_out,
    k_in,
    compute_dtype=None,
    tm=None,
    tn=None,
    tk=None,
    force_pallas=False,
):
    *lead, k_x = x.shape
    assert k_x == k_in, f"in_features mismatch: {k_x} vs {k_in}"
    k_p, n_p = w_kn.shape

    # ---- dtype handling (cast x UP rather than the weight DOWN) ----
    if compute_dtype is not None:
        out_dtype = x.dtype
        x_c = x.astype(compute_dtype)
        w_c = w_kn if w_kn.dtype == jnp.dtype(compute_dtype) else w_kn.astype(compute_dtype)
    else:
        cdt = jnp.promote_types(x.dtype, w_kn.dtype)
        out_dtype = cdt
        x_c = x if x.dtype == cdt else x.astype(cdt)
        w_c = w_kn if w_kn.dtype == cdt else w_kn.astype(cdt)

    x2d = x_c.reshape(-1, k_in)
    m = x2d.shape[0]

    # Tiny problems: per-grid-step overhead exceeds the matmul; let XLA fuse it.
    if not force_pallas and (m * n_out * k_in) < (1 << 21):
        y2d = jnp.dot(
            x2d, w_c[:k_in, :n_out], preferred_element_type=jnp.float32
        ).astype(out_dtype)
        return y2d.reshape(*lead, n_out)

    # Pad x along K only if the original in_features was not 128-aligned
    # (the weight was already padded once at prepare time).
    if k_p != k_in:
        x2d = jnp.pad(x2d, ((0, 0), (0, k_p - k_in)))

    gen = _tpu_generation()
    compute_itemsize = x2d.dtype.itemsize
    out_itemsize = jnp.dtype(out_dtype).itemsize
    tm_max, tn_max, tk_max, vmem_limit = _default_tiles(gen, compute_itemsize)

    # Native sublane granule for the M axis (8 f32, 16 bf16, 32 int8/fp8) so
    # output stores stay unmasked.
    m_granule = max(8, 32 // min(compute_itemsize, out_itemsize))

    tm_user, tn_user, tk_user = tm is not None, tn is not None, tk is not None
    m_p0 = _round_up(m, m_granule)
    if not tm_user:
        tm = _pick_tile(m_p0, tm_max, m_granule)
    if not tn_user:
        tn = _pick_tile(n_p, tn_max, 128)
    if not tk_user:
        tk = _pick_tile(k_p, tk_max, 128)
    assert tm % 8 == 0 and tn % 128 == 0 and tk % 128 == 0, (tm, tn, tk)

    m_p = _round_up(m, tm)
    n_pp = _round_up(n_p, tn)
    k_pp = _round_up(k_p, tk)

    # v7x: 2 TensorCores per chip -> keep the parallel block count even.
    if gen >= 7:
        blocks = (m_p // tm) * (n_pp // tn)
        if blocks % 2 == 1:
            if (not tn_user) and tn % 256 == 0:
                tn //= 2
            elif (not tm_user) and tm % (2 * m_granule) == 0:
                tm //= 2

    # Pad only what is actually needed (auto tiles divide, so this is a no-op
    # unless the user forced non-dividing tile sizes or M is unaligned).
    if (k_pp, n_pp) != w_c.shape:
        w_c = jnp.pad(w_c, ((0, k_pp - k_p), (0, n_pp - n_p)))
    if (m_p, k_pp) != x2d.shape:
        x2d = jnp.pad(
            x2d, ((0, m_p - x2d.shape[0]), (0, k_pp - x2d.shape[1]))
        )

    grid = (m_p // tm, n_pp // tn, k_pp // tk)

    # Weight-streaming decode case: single M block -> deepen weight buffering.
    weight_blocks = (n_pp // tn) * (k_pp // tk)
    decode_like = (m_p // tm) == 1 and weight_blocks >= 3

    acc_in_out = jnp.dtype(out_dtype) == jnp.dtype(jnp.float32)
    kernel = _linear_kernel_acc_out if acc_in_out else _linear_kernel_scratch
    scratch = [] if acc_in_out else [pltpu.VMEM((tm, tn), jnp.float32)]

    try:
        cost = pl.CostEstimate(
            flops=2 * m_p * n_pp * k_pp,
            transcendentals=0,
            bytes_accessed=(
                m_p * k_pp * compute_itemsize
                + k_pp * n_pp * w_c.dtype.itemsize
                + m_p * n_pp * out_itemsize
            ),
        )
    except Exception:
        cost = None

    y2d = pl.pallas_call(
        kernel,
        out_shape=jax.ShapeDtypeStruct((m_p, n_pp), out_dtype),
        grid_spec=pltpu.PrefetchScalarGridSpec(
            num_scalar_prefetch=0,
            grid=grid,
            in_specs=[
                pl.BlockSpec((tm, tk), lambda i, j, k: (i, k)),   # x tile [M, K]
                _weight_block_spec(tk, tn, decode_like),          # w tile [K, N]
            ],
            out_specs=pl.BlockSpec((tm, tn), lambda i, j, k: (i, j)),
            scratch_shapes=scratch,
        ),
        compiler_params=pltpu.CompilerParams(
            dimension_semantics=("parallel", "parallel", "arbitrary"),
            vmem_limit_bytes=vmem_limit,
        ),
        cost_estimate=cost,
    )(x2d, w_c)

    return y2d[:m, :n_out].reshape(*lead, n_out)


# --------------------------------------------------------------------------
# Module equivalent: prepares the weight ONCE (transpose + pad + cast), then
# every forward call only runs the kernel.
# --------------------------------------------------------------------------
class LinearLayer:
    """y = matmul(x, weight.T) (or matmul(x, weight) if transpose_weight=False)."""

    def __init__(self, weight, *, transpose_weight=True, compute_dtype=None):
        weight = jnp.asarray(weight)
        if transpose_weight:
            n_out, k_in = weight.shape
            w_kn = weight.T                      # one-time [K, N] relayout
        else:
            k_in, n_out = weight.shape
            w_kn = weight
        if compute_dtype is not None:
            w_kn = w_kn.astype(compute_dtype)
        # One-time pad to 128-multiples: zero K-padding is numerically exact,
        # padded N columns are sliced off after the kernel.
        k_p = _round_up(k_in, 128)
        n_p = _round_up(n_out, 128)
        if (k_p, n_p) != (k_in, n_out):
            w_kn = jnp.pad(w_kn, ((0, k_p - k_in), (0, n_p - n_out)))
        self.w_kn = jax.device_put(w_kn)
        self.k_in = int(k_in)
        self.n_out = int(n_out)
        self.compute_dtype = compute_dtype

    def __call__(self, x, *, tm=None, tn=None, tk=None, force_pallas=False):
        return _linear_apply(
            x,
            self.w_kn,
            n_out=self.n_out,
            k_in=self.k_in,
            compute_dtype=self.compute_dtype,
            tm=tm,
            tn=tn,
            tk=tk,
            force_pallas=force_pallas,
        )


# --------------------------------------------------------------------------
# Demo / self-check (small, fast shapes)
# --------------------------------------------------------------------------
if __name__ == "__main__":
    key = jax.random.PRNGKey(0)
    k1, k2, k3, k4, k5, k6 = jax.random.split(key, 6)

    # 1) f32, aligned shapes: accumulate-into-output kernel, no padding needed.
    x = jax.random.normal(k1, (2, 16, 256), dtype=jnp.float32)
    w = jax.random.normal(k2, (512, 256), dtype=jnp.float32) * 0.05
    layer = LinearLayer(w)
    y = jax.block_until_ready(layer(x, force_pallas=True))
    y_ref = jnp.einsum("bsk,nk->bsn", x, w, preferred_element_type=jnp.float32)
    assert y.shape == (2, 16, 512)
    assert jnp.allclose(y, y_ref, atol=2e-2, rtol=2e-2), "f32 path mismatch"

    # 2) Odd, non-tile-multiple shapes: exercises one-time weight pad,
    #    per-call x pad and the output slice.
    x_odd = jax.random.normal(k3, (3, 13, 200), dtype=jnp.float32)
    w_odd = jax.random.normal(k4, (75, 200), dtype=jnp.float32) * 0.05
    layer_odd = LinearLayer(w_odd)
    y_odd = jax.block_until_ready(layer_odd(x_odd, force_pallas=True))
    y_odd_ref = jnp.einsum(
        "bsk,nk->bsn", x_odd, w_odd, preferred_element_type=jnp.float32
    )
    assert y_odd.shape == (3, 13, 75)
    assert jnp.allclose(y_odd, y_odd_ref, atol=2e-2, rtol=2e-2), "padding mismatch"

    # 3) bf16 inputs, multi-step K reduction: f32 scratch accumulator kernel.
    xb = jax.random.normal(k5, (2, 32, 512), dtype=jnp.float32).astype(jnp.bfloat16)
    wb = (jax.random.normal(k6, (384, 512), dtype=jnp.float32) * 0.03).astype(
        jnp.bfloat16
    )
    layer_b = LinearLayer(wb)
    yb = jax.block_until_ready(layer_b(xb, tk=256, force_pallas=True))
    yb_ref = jnp.einsum(
        "bsk,nk->bsn", xb.astype(jnp.float32), wb.astype(jnp.float32)
    )
    assert yb.shape == (2, 32, 384)
    assert jnp.allclose(
        yb.astype(jnp.float32), yb_ref, atol=5e-2, rtol=5e-2
    ), "bf16 path mismatch"

    # 4) Tiny problem: falls back to plain XLA dot (same semantics).
    x_s = jax.random.normal(k1, (2, 8, 32), dtype=jnp.float32)
    w_s = jax.random.normal(k2, (48, 32), dtype=jnp.float32) * 0.05
    y_s = jax.block_until_ready(LinearLayer(w_s)(x_s))
    y_s_ref = jnp.einsum("bsk,nk->bsn", x_s, w_s, preferred_element_type=jnp.float32)
    assert y_s.shape == (2, 8, 48)
    assert jnp.allclose(y_s, y_s_ref, atol=1e-4, rtol=1e-4), "fallback mismatch"

    print("KERNEL_OK")
</pallas_src>

<mosaic_0001>
module attributes {stable_mosaic.version = 11 : i64} {
  func.func @_linear_kernel_acc_out(%arg0: i32, %arg1: i32, %arg2: i32, %arg3: memref<32x256xf32, #tpu.memory_space<vmem>>, %arg4: memref<256x512xf32, #tpu.memory_space<vmem>>, %arg5: memref<32x512xf32, #tpu.memory_space<vmem>>) attributes {dimension_semantics = [#tpu.dimension_semantics<parallel>, #tpu.dimension_semantics<parallel>, #tpu.dimension_semantics<arbitrary>], iteration_bounds = array<i64: 1, 1, 1>, scalar_prefetch = 0 : i64, scratch_operands = 0 : i64, tpu.core_type = #tpu.core_type<tc>, window_params = [{transform_indices = @transform_0, window_bounds = array<i64: 32, 256>}, {transform_indices = @transform_1, window_bounds = array<i64: 256, 512>}, {transform_indices = @transform_2, window_bounds = array<i64: 32, 512>}]} {
    %c0_i32 = arith.constant 0 : i32
    %0 = arith.cmpi eq, %arg2, %c0_i32 : i32
    %1 = arith.extui %0 : i1 to i32
    %c0_i32_0 = arith.constant 0 : i32
    %2 = arith.cmpi ne, %1, %c0_i32_0 : i32
    scf.if %2 {
      %cst_8 = arith.constant 0.000000e+00 : f32
      %9 = vector.broadcast %cst_8 : f32 to vector<32x512xf32>
      %c0_9 = arith.constant 0 : index
      %c0_10 = arith.constant 0 : index
      %10 = vector.load %arg5[%c0_9, %c0_10] : memref<32x512xf32, #tpu.memory_space<vmem>>, vector<32x512xf32>
      tpu.vector_store %arg5[%c0_9, %c0_10], %9 {strides = array<i32>} : memref<32x512xf32, #tpu.memory_space<vmem>>, vector<32x512xf32>,
    } else {
    }
    %c0 = arith.constant 0 : index
    %c0_1 = arith.constant 0 : index
    %3 = vector.load %arg5[%c0, %c0_1] : memref<32x512xf32, #tpu.memory_space<vmem>>, vector<32x512xf32>
    %c0_2 = arith.constant 0 : index
    %c0_3 = arith.constant 0 : index
    %4 = vector.load %arg3[%c0_2, %c0_3] : memref<32x256xf32, #tpu.memory_space<vmem>>, vector<32x256xf32>
    %c0_4 = arith.constant 0 : index
    %c0_5 = arith.constant 0 : index
    %5 = vector.load %arg4[%c0_4, %c0_5] : memref<256x512xf32, #tpu.memory_space<vmem>>, vector<256x512xf32>
    %cst = arith.constant dense<0.000000e+00> : vector<32x512xf32>
    %6 = tpu.matmul %4, %5, %cst {dimension_numbers = #tpu.dot_dimension_numbers<[1], [0], [0], [1], [0, 0, 1, 1], [], []>} : vector<32x256xf32>, vector<256x512xf32>, vector<32x512xf32> -> vector<32x512xf32>
    %7 = arith.addf %3, %6 : vector<32x512xf32>
    %c0_6 = arith.constant 0 : index
    %c0_7 = arith.constant 0 : index
    %8 = vector.load %arg5[%c0_6, %c0_7] : memref<32x512xf32, #tpu.memory_space<vmem>>, vector<32x512xf32>
    tpu.vector_store %arg5[%c0_6, %c0_7], %7 {strides = array<i32>} : memref<32x512xf32, #tpu.memory_space<vmem>>, vector<32x512xf32>,
    return
  }
  func.func @transform_0(%arg0: i32, %arg1: i32, %arg2: i32) -> (i32, i32) {
    %c0_i32 = arith.constant 0 : i32
    return %arg0, %arg2 : i32, i32
  }
  func.func @transform_1(%arg0: i32, %arg1: i32, %arg2: i32) -> (i32, i32) {
    %c0_i32 = arith.constant 0 : i32
    return %arg2, %arg1 : i32, i32
  }
  func.func @transform_2(%arg0: i32, %arg1: i32, %arg2: i32) -> (i32, i32) {
    %c0_i32 = arith.constant 0 : i32
    return %arg0, %arg1 : i32, i32
  }
}

</mosaic_0001>

<bundles_post_ra>
// kernel: _linear_apply.1
= control target key start
LH: loop header
LB: loop body
LE: loop exit
PB: predicated region body
PF: predicated region fallthrough
CT: control target
= control target key end

     0   :  { %7 = vsyncpa [#allocation3], 0  ;;  %s712_s0 = inlined_call_operand.hbm [shape: f32[32,256], index: 0, kind: input, shape index: {}]   ;;  %s713_s1 = inlined_call_operand.hbm [shape: f32[256,512], index: 1, kind: input, shape index: {}]   ;;  %s714_s2 = inlined_call_operand.hbm [shape: f32[32,512], index: 2, kind: output, shape index: {}]  }
   0x1   :  { %8 = vsyncpa [#allocation6], 0 }
   0x2   :  { %9 = vsyncpa [#allocation4], 0  ;;  %s648_s9 = smov [#allocation2]   ;;  %s576_s13 = scalar_lea.hbm %s712_s0, 1024 }
   0x3   :  { %s15_s10 = sshll.u32 %s648_s9, 4  ;;  %p577_p0 = scmp.ne.s32.totalorder %s712_s0, %s576_s13  ;;  %s16_s10 = int_to_ptr.vmem [resolvable:$true] %s15_s10 }
   0x4   :  { %p580_p1 = scmp.lt.u32.totalorder %s576_s13, %s712_s0 }
   0x6   :  { %p582_p2 = pnand %p580_p1, %p577_p0 }
   0x8   :  { %585 = shalt.err (!%p582_p2)
}
   0x9   :  { %s586_s18 = scalar_lea.vmem %s16_s10, 1024  ;;  %p591_p4 = scmp.lt.s32.totalorder %s16_s10, %s16_s10 }
   0xa   :  { %p587_p3 = scmp.ne.s32.totalorder %s16_s10, %s586_s18  ;;  %p592_p5 = scmp.lt.s32.totalorder %s586_s18, %s586_s18 }
   0xc   :  { %p593_p6 = por %p592_p5, %p591_p4 }
   0xe   :  { %p594_p7 = pnand %p593_p6, %p587_p3 }
  0x10   :  { %597 = shalt.err (!%p594_p7)
}
  0x11   :  { %s649_s19 = smov 256   ;;  %s650_s20 = smov 16  }
  0x12   :  { %21 = dma.hbm_to_vmem [thread:$0]  %s712_s0, 1024, %s16_s10, [#allocation3], %s649_s19, %s649_s19, %s650_s20  }
  0x13   :  { %s651_s23 = smov [#allocation5]   ;;  %s598_s27 = scalar_lea.hbm %s713_s1, 16384 }
  0x14   :  { %s27_s24 = sshll.u32 %s651_s23, 4  ;;  %p599_p8 = scmp.ne.s32.totalorder %s713_s1, %s598_s27  ;;  %s28_s24 = int_to_ptr.vmem [resolvable:$true] %s27_s24 }
  0x15   :  { %p602_p9 = scmp.lt.u32.totalorder %s598_s27, %s713_s1 }
  0x17   :  { %p604_p10 = pnand %p602_p9, %p599_p8 }
  0x19   :  { %607 = shalt.err (!%p604_p10)
}
  0x1a   :  { %s608_s4 = scalar_lea.vmem %s28_s24, 16384  ;;  %p613_p12 = scmp.lt.s32.totalorder %s28_s24, %s28_s24 }
  0x1b   :  { %p609_p11 = scmp.ne.s32.totalorder %s28_s24, %s608_s4  ;;  %p614_p13 = scmp.lt.s32.totalorder %s608_s4, %s608_s4 }
  0x1d   :  { %p615_p0 = por %p614_p13, %p613_p12 }
  0x1f   :  { %p616_p1 = pnand %p615_p0, %p609_p11 }
  0x21   :  { %619 = shalt.err (!%p616_p1)
}
  0x22   :  { %s652_s0 = smov 512   ;;  %s653_s5 = smov 32  }
  0x23   :  { %33 = dma.hbm_to_vmem [thread:$0]  %s713_s1, 16384, %s28_s24, [#allocation6], %s652_s0, %s652_s0, %s653_s5  }
  0x24   :  { %642 = dma.done.wait [#allocation3], 1024  }
  0x25   :  { %643 = vsyncadd [#allocation3], 4294966272 }
  0x26   :  { %644 = dma.done.wait [#allocation6], 16384  }
  0x27   :  { %645 = vsyncadd [#allocation6], 4294950912  ;;  %v85_v0 = vld [vmem:[#allocation5 + $0x8] sm:$0xff]  ;;  %v87_v2 = vld [vmem:[#allocation5 + $0x18] sm:$0xff]  ;;  %s654_s1 = smov [#allocation7]  }
  0x28   :  { %v89_v1 = vld [vmem:[#allocation5 + $0x28] sm:$0xff]  ;;  %v91_v4 = vld [vmem:[#allocation5 + $0x38] sm:$0xff]  ;;  %v84_v5 = vld [vmem:[#allocation5] sm:$0xff]  ;;  %s427_s8 = sshll.u32 %s654_s1, 4  ;;  %s428_s8 = int_to_ptr.vmem [resolvable:$true] %s427_s8 }
  0x29   :  { %v440_v3 = vpack.c.bf16 %v89_v1, %v85_v0  ;;  %v88_v6 = vld [vmem:[#allocation5 + $0x20] sm:$0xff]  ;;  %v504_v7 = vpack.c.bf16 %v91_v4, %v87_v2  ;;  %v86_v9 = vld [vmem:[#allocation5 + $0x10] sm:$0xff]  ;;  %v93_v11 = vld [vmem:[#allocation5 + $0x48] sm:$0xff]  ;;  %s620_s9 = scalar_lea.vmem %s428_s8, 2048  ;;  %p625_p3 = scmp.lt.s32.totalorder %s428_s8, %s428_s8 }
  0x2a   :  { %v442_v8 = vpack.c.bf16 %v88_v6, %v84_v5  ;;  %v90_v10 = vld [vmem:[#allocation5 + $0x30] sm:$0xff]  ;;  %v97_v13 = vld [vmem:[#allocation5 + $0x68] sm:$0xff]  ;;  %v95_v14 = vld [vmem:[#allocation5 + $0x58] sm:$0xff]  ;;  %p621_p2 = scmp.ne.s32.totalorder %s428_s8, %s620_s9  ;;  %p626_p4 = scmp.lt.s32.totalorder %s620_s9, %s620_s9 }
  0x2b   :  { %441 = vmatprep.subr.bf16.mxu0 %v440_v3  ;;  %v506_v12 = vpack.c.bf16 %v90_v10, %v86_v9  ;;  %v99_v15 = vld [vmem:[#allocation5 + $0x78] sm:$0xff]  ;;  %505 = vmatprep.subr.bf16.mxu1 %v504_v7  ;;  %v444_v16 = vpack.c.bf16 %v97_v13, %v93_v11  ;;  %v92_v18 = vld [vmem:[#allocation5 + $0x40] sm:$0xff]  ;;  %v94_v20 = vld [vmem:[#allocation5 + $0x50] sm:$0xff] }
  0x2c   :  { %443 = vmatpush1.bf16.msra.mxu0 %v442_v8  ;;  %v508_v17 = vpack.c.bf16 %v99_v15, %v95_v14  ;;  %v96_v19 = vld [vmem:[#allocation5 + $0x60] sm:$0xff]  ;;  %v98_v22 = vld [vmem:[#allocation5 + $0x70] sm:$0xff]  ;;  %v101_v23 = vld [vmem:[#allocation5 + $0x88] sm:$0xff]  ;;  %p627_p5 = por %p626_p4, %p625_p3 }
  0x2d   :  { %507 = vmatpush1.bf16.msra.mxu1 %v506_v12  ;;  %v446_v21 = vpack.c.bf16 %v96_v19, %v92_v18  ;;  %v105_v24 = vld [vmem:[#allocation5 + $0xa8] sm:$0xff]  ;;  %445 = vmatprep.subr.bf16.mxu0 %v444_v16  ;;  %v510_v25 = vpack.c.bf16 %v98_v22, %v94_v20  ;;  %v103_v27 = vld [vmem:[#allocation5 + $0x98] sm:$0xff]  ;;  %v100_v29 = vld [vmem:[#allocation5 + $0x80] sm:$0xff] }
  0x2e   :  { %509 = vmatprep.subr.bf16.mxu1 %v508_v17  ;;  %v448_v26 = vpack.c.bf16 %v105_v24, %v101_v23  ;;  %v107_v28 = vld [vmem:[#allocation5 + $0xb8] sm:$0xff]  ;;  %v104_v31 = vld [vmem:[#allocation5 + $0xa0] sm:$0xff]  ;;  %v102_v32 = vld [vmem:[#allocation5 + $0x90] sm:$0xff]  ;;  %p628_p6 = pnand %p627_p5, %p621_p2 }
  0x2f   :  { %v512_v30 = vpack.c.bf16 %v107_v28, %v103_v27  ;;  %v106_v33 = vld [vmem:[#allocation5 + $0xb0] sm:$0xff]  ;;  %v450_v34 = vpack.c.bf16 %v104_v31, %v100_v29  ;;  %v109_v35 = vld [vmem:[#allocation5 + $0xc8] sm:$0xff]  ;;  %v111_v37 = vld [vmem:[#allocation5 + $0xd8] sm:$0xff] }
  0x30   :  { %447 = vmatpush1.bf16.msra.mxu0 %v446_v21  ;;  %v113_v36 = vld [vmem:[#allocation5 + $0xe8] sm:$0xff]  ;;  %v514_v38 = vpack.c.bf16 %v106_v33, %v102_v32  ;;  %v115_v40 = vld [vmem:[#allocation5 + $0xf8] sm:$0xff]  ;;  %v108_v41 = vld [vmem:[#allocation5 + $0xc0] sm:$0xff] }
  0x31   :  { %511 = vmatpush1.bf16.msra.mxu1 %v510_v25  ;;  %449 = vmatprep.subr.bf16.mxu0 %v448_v26  ;;  %v452_v39 = vpack.c.bf16 %v113_v36, %v109_v35  ;;  %v112_v42 = vld [vmem:[#allocation5 + $0xe0] sm:$0xff]  ;;  %v516_v43 = vpack.c.bf16 %v115_v40, %v111_v37  ;;  %v110_v44 = vld [vmem:[#allocation5 + $0xd0] sm:$0xff]  ;;  %v117_v46 = vld [vmem:[#allocation5 + $0x108] sm:$0xff] }
  0x32   :  { %513 = vmatprep.subr.bf16.mxu1 %v512_v30  ;;  %v114_v45 = vld [vmem:[#allocation5 + $0xf0] sm:$0xff]  ;;  %v121_v47 = vld [vmem:[#allocation5 + $0x128] sm:$0xff]  ;;  %v119_v48 = vld [vmem:[#allocation5 + $0x118] sm:$0xff]  ;;  %v454_v50 = vpack.c.bf16 %v112_v42, %v108_v41 }
  0x33   :  { %v123_v49 = vld [vmem:[#allocation5 + $0x138] sm:$0xff]  ;;  %v518_v51 = vpack.c.bf16 %v114_v45, %v110_v44  ;;  %v456_v52 = vpack.c.bf16 %v121_v47, %v117_v46  ;;  %v116_v53 = vld [vmem:[#allocation5 + $0x100] sm:$0xff]  ;;  %v118_v55 = vld [vmem:[#allocation5 + $0x110] sm:$0xff] }
  0x34   :  { %451 = vmatpush1.bf16.msra.mxu0 %v450_v34  ;;  %v120_v54 = vld [vmem:[#allocation5 + $0x120] sm:$0xff]  ;;  %v520_v56 = vpack.c.bf16 %v123_v49, %v119_v48  ;;  %v122_v57 = vld [vmem:[#allocation5 + $0x130] sm:$0xff]  ;;  %v125_v58 = vld [vmem:[#allocation5 + $0x148] sm:$0xff] }
  0x35   :  { %515 = vmatpush1.bf16.msra.mxu1 %v514_v38  ;;  %453 = vmatprep.subr.bf16.mxu0 %v452_v39  ;;  %v129_v59 = vld [vmem:[#allocation5 + $0x168] sm:$0xff]  ;;  %v127_v60 = vld [vmem:[#allocation5 + $0x158] sm:$0xff]  ;;  %v458_v62 = vpack.c.bf16 %v120_v54, %v116_v53  ;;  %v522_v63 = vpack.c.bf16 %v122_v57, %v118_v55  ;;  %v124_v1 = vld [vmem:[#allocation5 + $0x140] sm:$0xff] }
  0x36   :  { %517 = vmatprep.subr.bf16.mxu1 %v516_v43  ;;  %v131_v61 = vld [vmem:[#allocation5 + $0x178] sm:$0xff]  ;;  %v460_v0 = vpack.c.bf16 %v129_v59, %v125_v58  ;;  %v128_v2 = vld [vmem:[#allocation5 + $0x160] sm:$0xff]  ;;  %v126_v3 = vld [vmem:[#allocation5 + $0x150] sm:$0xff] }
  0x37   :  { %v524_v4 = vpack.c.bf16 %v131_v61, %v127_v60  ;;  %v130_v5 = vld [vmem:[#allocation5 + $0x170] sm:$0xff]  ;;  %v133_v6 = vld [vmem:[#allocation5 + $0x188] sm:$0xff]  ;;  %v135_v8 = vld [vmem:[#allocation5 + $0x198] sm:$0xff]  ;;  %v462_v10 = vpack.c.bf16 %v128_v2, %v124_v1 }
  0x38   :  { %455 = vmatpush1.bf16.msra.mxu0 %v454_v50  ;;  %v137_v7 = vld [vmem:[#allocation5 + $0x1a8] sm:$0xff]  ;;  %v139_v9 = vld [vmem:[#allocation5 + $0x1b8] sm:$0xff]  ;;  %v526_v11 = vpack.c.bf16 %v130_v5, %v126_v3  ;;  %v132_v13 = vld [vmem:[#allocation5 + $0x180] sm:$0xff] }
  0x39   :  { %519 = vmatpush1.bf16.msra.mxu1 %v518_v51  ;;  %457 = vmatprep.subr.bf16.mxu0 %v456_v52  ;;  %v464_v12 = vpack.c.bf16 %v137_v7, %v133_v6  ;;  %v136_v14 = vld [vmem:[#allocation5 + $0x1a0] sm:$0xff]  ;;  %v134_v15 = vld [vmem:[#allocation5 + $0x190] sm:$0xff]  ;;  %v528_v16 = vpack.c.bf16 %v139_v9, %v135_v8  ;;  %v141_v18 = vld [vmem:[#allocation5 + $0x1c8] sm:$0xff] }
  0x3a   :  { %521 = vmatprep.subr.bf16.mxu1 %v520_v56  ;;  %v138_v17 = vld [vmem:[#allocation5 + $0x1b0] sm:$0xff]  ;;  %v145_v19 = vld [vmem:[#allocation5 + $0x1e8] sm:$0xff]  ;;  %v143_v20 = vld [vmem:[#allocation5 + $0x1d8] sm:$0xff]  ;;  %v466_v22 = vpack.c.bf16 %v136_v14, %v132_v13 }
  0x3b   :  { %v147_v21 = vld [vmem:[#allocation5 + $0x1f8] sm:$0xff]  ;;  %v530_v23 = vpack.c.bf16 %v138_v17, %v134_v15  ;;  %v468_v24 = vpack.c.bf16 %v145_v19, %v141_v18  ;;  %v140_v25 = vld [vmem:[#allocation5 + $0x1c0] sm:$0xff]  ;;  %v142_v27 = vld [vmem:[#allocation5 + $0x1d0] sm:$0xff] }
  0x3c   :  { %459 = vmatpush1.bf16.msra.mxu0 %v458_v62  ;;  %v144_v26 = vld [vmem:[#allocation5 + $0x1e0] sm:$0xff]  ;;  %v532_v28 = vpack.c.bf16 %v147_v21, %v143_v20  ;;  %v146_v29 = vld [vmem:[#allocation5 + $0x1f0] sm:$0xff]  ;;  %v149_v30 = vld [vmem:[#allocation5 + $0x208] sm:$0xff] }
  0x3d   :  { %523 = vmatpush1.bf16.msra.mxu1 %v522_v63  ;;  %461 = vmatprep.subr.bf16.mxu0 %v460_v0  ;;  %v153_v31 = vld [vmem:[#allocation5 + $0x228] sm:$0xff]  ;;  %v151_v32 = vld [vmem:[#allocation5 + $0x218] sm:$0xff]  ;;  %v470_v34 = vpack.c.bf16 %v144_v26, %v140_v25  ;;  %v534_v35 = vpack.c.bf16 %v146_v29, %v142_v27  ;;  %v148_v37 = vld [vmem:[#allocation5 + $0x200] sm:$0xff] }
  0x3e   :  { %525 = vmatprep.subr.bf16.mxu1 %v524_v4  ;;  %v155_v33 = vld [vmem:[#allocation5 + $0x238] sm:$0xff]  ;;  %v472_v36 = vpack.c.bf16 %v153_v31, %v149_v30  ;;  %v152_v38 = vld [vmem:[#allocation5 + $0x220] sm:$0xff]  ;;  %v150_v39 = vld [vmem:[#allocation5 + $0x210] sm:$0xff] }
  0x3f   :  { %v536_v40 = vpack.c.bf16 %v155_v33, %v151_v32  ;;  %v154_v41 = vld [vmem:[#allocation5 + $0x230] sm:$0xff]  ;;  %v157_v42 = vld [vmem:[#allocation5 + $0x248] sm:$0xff]  ;;  %v159_v44 = vld [vmem:[#allocation5 + $0x258] sm:$0xff]  ;;  %v474_v46 = vpack.c.bf16 %v152_v38, %v148_v37 }
  0x40   :  { %463 = vmatpush1.bf16.msra.mxu0 %v462_v10  ;;  %v161_v43 = vld [vmem:[#allocation5 + $0x268] sm:$0xff]  ;;  %v163_v45 = vld [vmem:[#allocation5 + $0x278] sm:$0xff]  ;;  %v538_v47 = vpack.c.bf16 %v154_v41, %v150_v39  ;;  %v156_v49 = vld [vmem:[#allocation5 + $0x240] sm:$0xff] }
  0x41   :  { %527 = vmatpush1.bf16.msra.mxu1 %v526_v11  ;;  %465 = vmatprep.subr.bf16.mxu0 %v464_v12  ;;  %v476_v48 = vpack.c.bf16 %v161_v43, %v157_v42  ;;  %v160_v50 = vld [vmem:[#allocation5 + $0x260] sm:$0xff]  ;;  %v158_v51 = vld [vmem:[#allocation5 + $0x250] sm:$0xff]  ;;  %v540_v52 = vpack.c.bf16 %v163_v45, %v159_v44  ;;  %v165_v54 = vld [vmem:[#allocation5 + $0x288] sm:$0xff] }
  0x42   :  { %529 = vmatprep.subr.bf16.mxu1 %v528_v16  ;;  %v162_v53 = vld [vmem:[#allocation5 + $0x270] sm:$0xff]  ;;  %v169_v55 = vld [vmem:[#allocation5 + $0x2a8] sm:$0xff]  ;;  %v167_v56 = vld [vmem:[#allocation5 + $0x298] sm:$0xff]  ;;  %v478_v58 = vpack.c.bf16 %v160_v50, %v156_v49 }
  0x43   :  { %v171_v57 = vld [vmem:[#allocation5 + $0x2b8] sm:$0xff]  ;;  %v542_v59 = vpack.c.bf16 %v162_v53, %v158_v51  ;;  %v480_v60 = vpack.c.bf16 %v169_v55, %v165_v54  ;;  %v164_v61 = vld [vmem:[#allocation5 + $0x280] sm:$0xff]  ;;  %v166_v63 = vld [vmem:[#allocation5 + $0x290] sm:$0xff] }
  0x44   :  { %467 = vmatpush1.bf16.msra.mxu0 %v466_v22  ;;  %v168_v62 = vld [vmem:[#allocation5 + $0x2a0] sm:$0xff]  ;;  %v544_v0 = vpack.c.bf16 %v171_v57, %v167_v56  ;;  %v170_v1 = vld [vmem:[#allocation5 + $0x2b0] sm:$0xff]  ;;  %v173_v2 = vld [vmem:[#allocation5 + $0x2c8] sm:$0xff] }
  0x45   :  { %531 = vmatpush1.bf16.msra.mxu1 %v530_v23  ;;  %469 = vmatprep.subr.bf16.mxu0 %v468_v24  ;;  %v177_v3 = vld [vmem:[#allocation5 + $0x2e8] sm:$0xff]  ;;  %v175_v4 = vld [vmem:[#allocation5 + $0x2d8] sm:$0xff]  ;;  %v482_v6 = vpack.c.bf16 %v168_v62, %v164_v61  ;;  %v172_v7 = vld [vmem:[#allocation5 + $0x2c0] sm:$0xff]  ;;  %v546_v8 = vpack.c.bf16 %v170_v1, %v166_v63 }
  0x46   :  { %533 = vmatprep.subr.bf16.mxu1 %v532_v28  ;;  %v179_v5 = vld [vmem:[#allocation5 + $0x2f8] sm:$0xff]  ;;  %v484_v9 = vpack.c.bf16 %v177_v3, %v173_v2  ;;  %v176_v10 = vld [vmem:[#allocation5 + $0x2e0] sm:$0xff]  ;;  %v174_v11 = vld [vmem:[#allocation5 + $0x2d0] sm:$0xff] }
  0x47   :  { %v178_v12 = vld [vmem:[#allocation5 + $0x2f0] sm:$0xff]  ;;  %v548_v13 = vpack.c.bf16 %v179_v5, %v175_v4  ;;  %v181_v14 = vld [vmem:[#allocation5 + $0x308] sm:$0xff]  ;;  %v183_v17 = vld [vmem:[#allocation5 + $0x318] sm:$0xff]  ;;  %v486_v19 = vpack.c.bf16 %v176_v10, %v172_v7 }
  0x48   :  { %471 = vmatpush1.bf16.msra.mxu0 %v470_v34  ;;  %v185_v15 = vld [vmem:[#allocation5 + $0x328] sm:$0xff]  ;;  %v187_v18 = vld [vmem:[#allocation5 + $0x338] sm:$0xff]  ;;  %v550_v20 = vpack.c.bf16 %v178_v12, %v174_v11  ;;  %v180_v22 = vld [vmem:[#allocation5 + $0x300] sm:$0xff] }
  0x49   :  { %535 = vmatpush1.bf16.msra.mxu1 %v534_v35  ;;  %473 = vmatprep.subr.bf16.mxu0 %v472_v36  ;;  %v77_v16 = vld [vmem:[#allocation2 + $0x8] sm:$0xff]  ;;  %v488_v21 = vpack.c.bf16 %v185_v15, %v181_v14  ;;  %v184_v23 = vld [vmem:[#allocation5 + $0x320] sm:$0xff]  ;;  %v182_v24 = vld [vmem:[#allocation5 + $0x310] sm:$0xff]  ;;  %v552_v25 = vpack.c.bf16 %v187_v18, %v183_v17 }
  0x4a   :  { %537 = vmatprep.subr.bf16.mxu1 %v536_v40  ;;  %276 = vmatprep.mubr.f32.mxu0 %v77_v16  ;;  %v186_v26 = vld [vmem:[#allocation5 + $0x330] sm:$0xff]  ;;  %v189_v27 = vld [vmem:[#allocation5 + $0x348] sm:$0xff]  ;;  %v191_v29 = vld [vmem:[#allocation5 + $0x358] sm:$0xff]  ;;  %v490_v31 = vpack.c.bf16 %v184_v23, %v180_v22 }
  0x4b   :  { %365 = vmatprep.mubr.f32.mxu1 %v77_v16  ;;  %v193_v28 = vld [vmem:[#allocation5 + $0x368] sm:$0xff]  ;;  %v195_v30 = vld [vmem:[#allocation5 + $0x378] sm:$0xff]  ;;  %v554_v32 = vpack.c.bf16 %v186_v26, %v182_v24  ;;  %v188_v34 = vld [vmem:[#allocation5 + $0x340] sm:$0xff] }
  0x4c   :  { %475 = vmatpush1.bf16.msra.mxu0 %v474_v46  ;;  %v492_v33 = vpack.c.bf16 %v193_v28, %v189_v27  ;;  %v192_v35 = vld [vmem:[#allocation5 + $0x360] sm:$0xff]  ;;  %v190_v36 = vld [vmem:[#allocation5 + $0x350] sm:$0xff]  ;;  %v556_v37 = vpack.c.bf16 %v195_v30, %v191_v29  ;;  %v197_v39 = vld [vmem:[#allocation5 + $0x388] sm:$0xff] }
  0x4d   :  { %539 = vmatpush1.bf16.msra.mxu1 %v538_v47  ;;  %477 = vmatprep.subr.bf16.mxu0 %v476_v48  ;;  %v194_v38 = vld [vmem:[#allocation5 + $0x370] sm:$0xff]  ;;  %v201_v40 = vld [vmem:[#allocation5 + $0x3a8] sm:$0xff]  ;;  %v199_v41 = vld [vmem:[#allocation5 + $0x398] sm:$0xff]  ;;  %v494_v43 = vpack.c.bf16 %v192_v35, %v188_v34 }
  0x4e   :  { %541 = vmatprep.subr.bf16.mxu1 %v540_v52  ;;  %v203_v42 = vld [vmem:[#allocation5 + $0x3b8] sm:$0xff]  ;;  %v558_v44 = vpack.c.bf16 %v194_v38, %v190_v36  ;;  %v496_v45 = vpack.c.bf16 %v201_v40, %v197_v39  ;;  %v196_v46 = vld [vmem:[#allocation5 + $0x380] sm:$0xff]  ;;  %v198_v48 = vld [vmem:[#allocation5 + $0x390] sm:$0xff] }
  0x4f   :  { %v200_v47 = vld [vmem:[#allocation5 + $0x3a0] sm:$0xff]  ;;  %v560_v49 = vpack.c.bf16 %v203_v42, %v199_v41  ;;  %v202_v50 = vld [vmem:[#allocation5 + $0x3b0] sm:$0xff]  ;;  %v205_v51 = vld [vmem:[#allocation5 + $0x3c8] sm:$0xff] }
  0x50   :  { %479 = vmatpush1.bf16.msra.mxu0 %v478_v58  ;;  %v209_v52 = vld [vmem:[#allocation5 + $0x3e8] sm:$0xff]  ;;  %v207_v53 = vld [vmem:[#allocation5 + $0x3d8] sm:$0xff]  ;;  %v498_v55 = vpack.c.bf16 %v200_v47, %v196_v46  ;;  %v562_v56 = vpack.c.bf16 %v202_v50, %v198_v48  ;;  %v204_v58 = vld [vmem:[#allocation5 + $0x3c0] sm:$0xff] }
  0x51   :  { %543 = vmatpush1.bf16.msra.mxu1 %v542_v59  ;;  %481 = vmatprep.subr.bf16.mxu0 %v480_v60  ;;  %v211_v54 = vld [vmem:[#allocation5 + $0x3f8] sm:$0xff]  ;;  %v500_v57 = vpack.c.bf16 %v209_v52, %v205_v51  ;;  %v208_v59 = vld [vmem:[#allocation5 + $0x3e0] sm:$0xff]  ;;  %v206_v61 = vld [vmem:[#allocation5 + $0x3d0] sm:$0xff] }
  0x52   :  { %545 = vmatprep.subr.bf16.mxu1 %v544_v0  ;;  %v564_v60 = vpack.c.bf16 %v211_v54, %v207_v53  ;;  %v210_v62 = vld [vmem:[#allocation5 + $0x3f0] sm:$0xff]  ;;  %v502_v63 = vpack.c.bf16 %v208_v59, %v204_v58  ;;  %v76_v1 = vld [vmem:[#allocation2] sm:$0xff]  ;;  %v79_v2 = vld [vmem:[#allocation2 + $0x18] sm:$0xff] }
  0x53   :  { %v566_v0 = vpack.c.bf16 %v210_v62, %v206_v61  ;;  %v78_v3 = vld [vmem:[#allocation2 + $0x10] sm:$0xff]  ;;  %v81_v4 = vld [vmem:[#allocation2 + $0x28] sm:$0xff]  ;;  %v80_v5 = vld [vmem:[#allocation2 + $0x20] sm:$0xff] }
  0x54   :  { %483 = vmatpush1.bf16.msra.mxu0 %v482_v6  ;;  %v83_v6 = vld [vmem:[#allocation2 + $0x38] sm:$0xff]  ;;  %v82_v7 = vld [vmem:[#allocation2 + $0x30] sm:$0xff] }
  0x55   :  { %547 = vmatpush1.bf16.msra.mxu1 %v546_v8  ;;  %485 = vmatprep.subr.bf16.mxu0 %v484_v9 }
  0x56   :  { %549 = vmatprep.subr.bf16.mxu1 %v548_v13 }
  0x58   :  { %487 = vmatpush1.bf16.msra.mxu0 %v486_v19 }
  0x59   :  { %551 = vmatpush1.bf16.msra.mxu1 %v550_v20  ;;  %489 = vmatprep.subr.bf16.mxu0 %v488_v21 }
  0x5a   :  { %553 = vmatprep.subr.bf16.mxu1 %v552_v25 }
  0x5c   :  { %491 = vmatpush1.bf16.msra.mxu0 %v490_v31 }
  0x5d   :  { %555 = vmatpush1.bf16.msra.mxu1 %v554_v32  ;;  %493 = vmatprep.subr.bf16.mxu0 %v492_v33 }
  0x5e   :  { %557 = vmatprep.subr.bf16.mxu1 %v556_v37 }
  0x60   :  { %495 = vmatpush1.bf16.msra.mxu0 %v494_v43 }
  0x61   :  { %559 = vmatpush1.bf16.msra.mxu1 %v558_v44  ;;  %497 = vmatprep.subr.bf16.mxu0 %v496_v45 }
  0x62   :  { %561 = vmatprep.subr.bf16.mxu1 %v560_v49 }
  0x64   :  { %499 = vmatpush1.bf16.msra.mxu0 %v498_v55 }
  0x65   :  { %563 = vmatpush1.bf16.msra.mxu1 %v562_v56  ;;  %501 = vmatprep.subr.bf16.mxu0 %v500_v57 }
  0x66   :  { %565 = vmatprep.subr.bf16.mxu1 %v564_v60 }
  0x68   :  { %503 = vmatpush1.bf16.msra.mxu0 %v502_v63 }
  0x69   :  { %567 = vmatpush1.bf16.msra.mxu1 %v566_v0 }
  0x6b   :  { %277 = vmatmul.mubr.f32.vlgmr.msra.gmra.mrb[0].mxu0 %v76_v1 }
  0x6c   :  { %366 = vmatmul.mubr.f32.vlgmr.msra.gmra.mrb[0].mxu1 %v76_v1  ;;  %282 = vmatprep.mubr.f32.mxu0 %v79_v2 }
  0x6d   :  { %371 = vmatprep.mubr.f32.mxu1 %v79_v2 }
  0x6f   :  { %283 = vmatmul.mubr.f32.gmra.mrb[2].mxu0 %v78_v3 }
  0x70   :  { %372 = vmatmul.mubr.f32.gmra.mrb[2].mxu1 %v78_v3  ;;  %288 = vmatprep.mubr.f32.mxu0 %v81_v4 }
  0x71   :  { %377 = vmatprep.mubr.f32.mxu1 %v81_v4 }
  0x73   :  { %289 = vmatmul.mubr.f32.gmra.mrb[4].mxu0 %v80_v5 }
  0x74   :  { %378 = vmatmul.mubr.f32.gmra.mrb[4].mxu1 %v80_v5  ;;  %294 = vmatprep.mubr.f32.mxu0 %v83_v6 }
  0x75   :  { %383 = vmatprep.mubr.f32.mxu1 %v83_v6 }
  0x77   :  { %295 = vmatmul.mubr.f32.gmra.mrb[6].mxu0 %v82_v7 }
  0x78   :  { %384 = vmatmul.mubr.f32.gmra.mrb[6].mxu1 %v82_v7 }
 0x13e   :  { %v278_v8 = vpop.f32.mrb[0].mxu0 }
 0x13f   :  { %v367_v9 = vpop.f32.mrb[0].mxu1  ;;  %v280_v10 = vpop.f32.mrb[1].mxu0  ;;  %406 = vst [vmem:[#allocation7] sm:$0xff] %v278_v8 }
 0x140   :  { %v369_v11 = vpop.f32.mrb[1].mxu1  ;;  %408 = vst [vmem:[#allocation7 + $0x10] sm:$0xff] %v367_v9  ;;  %407 = vst [vmem:[#allocation7 + $0x8] sm:$0xff] %v280_v10 }
 0x141   :  { %409 = vst [vmem:[#allocation7 + $0x18] sm:$0xff] %v369_v11 }
 0x142   :  { %v284_v12 = vpop.f32.mrb[2].mxu0 }
 0x143   :  { %v373_v13 = vpop.f32.mrb[2].mxu1  ;;  %v286_v14 = vpop.f32.mrb[3].mxu0  ;;  %410 = vst [vmem:[#allocation7 + $0x20] sm:$0xff] %v284_v12 }
 0x144   :  { %v375_v15 = vpop.f32.mrb[3].mxu1  ;;  %412 = vst [vmem:[#allocation7 + $0x30] sm:$0xff] %v373_v13  ;;  %411 = vst [vmem:[#allocation7 + $0x28] sm:$0xff] %v286_v14 }
 0x145   :  { %413 = vst [vmem:[#allocation7 + $0x38] sm:$0xff] %v375_v15 }
 0x146   :  { %v290_v16 = vpop.f32.mrb[4].mxu0 }
 0x147   :  { %v379_v17 = vpop.f32.mrb[4].mxu1  ;;  %v292_v18 = vpop.f32.mrb[5].mxu0  ;;  %414 = vst [vmem:[#allocation7 + $0x40] sm:$0xff] %v290_v16 }
 0x148   :  { %v381_v19 = vpop.f32.mrb[5].mxu1  ;;  %416 = vst [vmem:[#allocation7 + $0x50] sm:$0xff] %v379_v17  ;;  %415 = vst [vmem:[#allocation7 + $0x48] sm:$0xff] %v292_v18 }
 0x149   :  { %417 = vst [vmem:[#allocation7 + $0x58] sm:$0xff] %v381_v19 }
 0x14a   :  { %v296_v20 = vpop.f32.mrb[6].mxu0 }
 0x14b   :  { %v385_v21 = vpop.f32.mrb[6].mxu1  ;;  %v298_v22 = vpop.f32.mrb[7].mxu0  ;;  %418 = vst [vmem:[#allocation7 + $0x60] sm:$0xff] %v296_v20 }
 0x14c   :  { %v387_v23 = vpop.f32.mrb[7].mxu1  ;;  %420 = vst [vmem:[#allocation7 + $0x70] sm:$0xff] %v385_v21  ;;  %419 = vst [vmem:[#allocation7 + $0x68] sm:$0xff] %v298_v22 }
 0x14d   :  { %421 = vst [vmem:[#allocation7 + $0x78] sm:$0xff] %v387_v23 }
 0x14e   :  { %631 = shalt.err (!%p628_p6)
}
 0x14f   :  { %s632_s12 = scalar_lea.hbm %s714_s2, 2048 }
 0x150   :  { %p633_p7 = scmp.ne.s32.totalorder %s714_s2, %s632_s12  ;;  %p636_p8 = scmp.lt.u32.totalorder %s632_s12, %s714_s2 }
 0x152   :  { %p638_p9 = pnand %p636_p8, %p633_p7 }
 0x154   :  { %641 = shalt.err (!%p638_p9)
}
 0x155   :  { %433 = dma.vmem_to_hbm [thread:$0]  %s428_s8, 2048, %s714_s2, [#allocation4], %s652_s0, %s652_s0, %s653_s5  }
 0x156   :  { %646 = dma.done.wait [#allocation4], 2048  }
 0x157   :  { %647 = vsyncadd [#allocation4], 4294965248 }
 0x158   :  { %437 = vsyncpa [#allocation3], 1 }
 0x159   :  { %438 = vsyncpa [#allocation6], 1 }
 0x15a   :  { %439 = vsyncpa [#allocation4], 1 }

</bundles_post_ra>
